<compile_context>
chip_gen: v6e
topology: v6e:2x2x1
jax: 0.10.0
libtpu: 0.0.40
codegen_flags: <defaults>
</compile_context>

<pallas_src>
import jax
import jax.numpy as jnp
from jax.experimental import pallas as pl
from jax.experimental.pallas import tpu as pltpu


_SUPPORTED_ACTS = ("relu", "tanh", "sigmoid")


def _round_up(x, m):
    return ((x + m - 1) // m) * m


def _make_ecell_kernel(error_act):
    """e[:, 0] = act(A - A_hat); e[:, 1] = act(A_hat - A) (one transcendental)."""

    def ecell_kernel(a_ref, ahat_ref, e_ref):
        diff = a_ref[...] - ahat_ref[...]          # (N, C, T) f32/bf16
        if error_act == "relu":
            pos = jnp.maximum(diff, 0)
            neg = pos - diff                       # max(-x,0) == max(x,0) - x (exact)
        elif error_act == "tanh":
            pos = jnp.tanh(diff)
            neg = -pos                             # tanh(-x) == -tanh(x)
        else:  # sigmoid: exp + reciprocal both live on the EUP slot
            pos = pl.reciprocal(1.0 + jnp.exp(-diff), approx=False)
            neg = 1.0 - pos                        # sigmoid(-x) == 1 - sigmoid(x)
        # Each half is a full-extent (N, C, T) slab of the (N, 2, C, T) block:
        # dense, unmasked stores regardless of C % 8.
        e_ref[:, 0, :, :] = pos.astype(e_ref.dtype)
        e_ref[:, 1, :, :] = neg.astype(e_ref.dtype)

    return ecell_kernel


def _vmem_budget_and_limit():
    """Generation-aware VMEM sizing.

    limit  = scoped VMEM cap handed to Mosaic (<= half physical, <= 64 MiB)
    budget = target for the double-buffered per-step footprint (headroom kept)
    v5e/v6e (128 MiB): limit 64 MiB, budget 48 MiB.  v7x (64 MiB): 32 / 24 MiB.
    """
    default_cap = 64 * 1024 * 1024
    try:
        cap = int(getattr(pltpu.get_tpu_info(), "vmem_capacity_bytes", default_cap))
    except Exception:
        cap = default_cap
    limit = min(cap // 2, 64 * 1024 * 1024)
    budget = (3 * limit) // 4
    return budget, limit


def _choose_spatial_tile(HW, N, C, in_itemsize, out_itemsize, vmem_budget_bytes):
    """Pick lane tile T (multiple of 128, or full HW) over the flattened H*W axis.

    Footprint accounting is sublane-padding aware: second-minor dims are padded
    to 8 (f32) / 16 (bf16) / 32 (int8) rows in VMEM, and every spec is
    double-buffered by the pipeline.
    """
    if HW <= 128:
        return HW                                   # single full-extent block
    sub_in = max(32 // in_itemsize, 8)
    sub_out = max(32 // out_itemsize, 8)
    c_in = _round_up(C, sub_in)
    c_out = _round_up(C, sub_out)
    # double-buffered bytes moved into VMEM per lane of T:
    #   2 inputs * 2 bufs * N * padded_C * in_bytes  +  2 bufs * N * 2 * padded_C * out_bytes
    per_lane = 2 * (2 * N * c_in * in_itemsize) + 2 * (N * 2 * c_out * out_itemsize)
    t_budget = max((vmem_budget_bytes // per_lane) // 128 * 128, 128)
    # Guarantee >= 2 grid steps (megacore load balance on v7x) when HW allows.
    half = _round_up(pl.cdiv(HW, 2), 128)
    T = min(t_budget, half)
    if T >= HW:
        return HW
    return T


def ecell_forward(A, A_hat, error_act="relu", out_dtype=None, spatial_tile=None):
    """E = cat(act(A - A_hat), act(A_hat - A), dim=1); NCHW in/out.

    `out_dtype` lets callers emit bf16 errors (pure bandwidth win) if the
    surrounding model allows it; defaults to the input dtype.
    """
    assert A.shape == A_hat.shape and A.dtype == A_hat.dtype
    if error_act not in _SUPPORTED_ACTS:
        raise ValueError(f"unsupported error_act: {error_act}")
    N, C, H, W = A.shape
    HW = H * W
    out_dtype = A.dtype if out_dtype is None else jnp.dtype(out_dtype)
    in_itemsize = jnp.dtype(A.dtype).itemsize
    out_itemsize = jnp.dtype(out_dtype).itemsize

    a2 = A.reshape(N, C, HW)
    ah2 = A_hat.reshape(N, C, HW)

    vmem_budget, vmem_limit = _vmem_budget_and_limit()

    if spatial_tile is None:
        T = _choose_spatial_tile(HW, N, C, in_itemsize, out_itemsize, vmem_budget)
    else:
        # Validate/round caller tile: full extent, or a multiple of 128.
        if spatial_tile >= HW:
            T = HW
        else:
            T = min(max((spatial_tile // 128) * 128, 128), HW)
    n_hw_tiles = pl.cdiv(HW, T)

    kernel = _make_ecell_kernel(error_act)

    # Streaming elementwise: ~3 flops/elem, <=1 transcendental/elem,
    # 2 reads + 2 writes per input element.
    elems = N * C * HW
    cost = pl.CostEstimate(
        flops=3 * elems,
        transcendentals=(0 if error_act == "relu" else elems),
        bytes_accessed=2 * elems * in_itemsize + 2 * elems * out_itemsize,
    )

    out = pl.pallas_call(
        kernel,
        out_shape=jax.ShapeDtypeStruct((N, 2, C, HW), out_dtype),
        grid_spec=pltpu.PrefetchScalarGridSpec(
            num_scalar_prefetch=0,
            grid=(n_hw_tiles,),
            in_specs=[
                pl.BlockSpec((N, C, T), lambda t: (0, 0, t)),
                pl.BlockSpec((N, C, T), lambda t: (0, 0, t)),
            ],
            out_specs=pl.BlockSpec((N, 2, C, T), lambda t: (0, 0, 0, t)),
        ),
        compiler_params=pltpu.CompilerParams(
            # Single independent axis -> shardable across v7x's 2 TCs; harmless
            # on single-TC v5e/v6e.
            dimension_semantics=("parallel",),
            vmem_limit_bytes=vmem_limit,
        ),
        cost_estimate=cost,
    )(a2, ah2)

    # (N, 2, C, HW) -> (N, 2C, H, W): row-major identical to torch.cat(dim=1).
    return out.reshape(N, 2 * C, H, W)


def _act_ref(name):
    if name == "relu":
        return lambda x: jnp.maximum(x, 0.0)
    if name == "tanh":
        return jnp.tanh
    if name == "sigmoid":
        return jax.nn.sigmoid
    raise ValueError(name)


def ecell_reference(A, A_hat, error_act="relu"):
    act = _act_ref(error_act)
    return jnp.concatenate((act(A - A_hat), act(A_hat - A)), axis=1)


if __name__ == "__main__":
    key = jax.random.PRNGKey(0)
    k1, k2, k3, k4 = jax.random.split(key, 4)

    # Case 1: canonical PredNet-ish shape, relu (exact identity), auto tiling
    # (HW=256 -> 2 tiles of 128: exercises the >=2-step megacore guarantee).
    N, C, H, W = 2, 4, 16, 16
    A = jax.random.normal(k1, (N, C, H, W), dtype=jnp.float32)
    A_hat = jax.random.normal(k2, (N, C, H, W), dtype=jnp.float32)
    E = jax.block_until_ready(ecell_forward(A, A_hat, error_act="relu"))
    E_ref = ecell_reference(A, A_hat, error_act="relu")
    assert E.shape == (N, 2 * C, H, W), E.shape
    assert jnp.allclose(E, E_ref, atol=1e-6, rtol=1e-6), "relu mismatch"

    # Case 2: C=3 (not a sublane multiple) + tanh — both half-stores stay dense
    # with the (N, 2, C, T) output layout.
    N2, C2, H2, W2 = 2, 3, 16, 16
    A2 = jax.random.normal(k3, (N2, C2, H2, W2), dtype=jnp.float32)
    A2_hat = jax.random.normal(k4, (N2, C2, H2, W2), dtype=jnp.float32)
    E2 = jax.block_until_ready(ecell_forward(A2, A2_hat, error_act="tanh"))
    E2_ref = ecell_reference(A2, A2_hat, error_act="tanh")
    assert E2.shape == (N2, 2 * C2, H2, W2), E2.shape
    assert jnp.allclose(E2, E2_ref, atol=1e-5, rtol=1e-5), "tanh mismatch"

    # Case 3: HW not a multiple of the tile (partial boundary block is masked),
    # caller-supplied tile validated/rounded to 128-multiple.
    N3, C3, H3, W3 = 2, 4, 24, 24          # HW = 576, tile 256 -> 3 tiles
    A3 = jax.random.normal(k1, (N3, C3, H3, W3), dtype=jnp.float32)
    A3_hat = jax.random.normal(k2, (N3, C3, H3, W3), dtype=jnp.float32)
    E3 = jax.block_until_ready(
        ecell_forward(A3, A3_hat, error_act="relu", spatial_tile=256))
    E3_ref = ecell_reference(A3, A3_hat, error_act="relu")
    assert jnp.allclose(E3, E3_ref, atol=1e-6, rtol=1e-6), "partial-block mismatch"

    # Case 4: sigmoid path (exp + reciprocal + complement).
    E4 = jax.block_until_ready(ecell_forward(A, A_hat, error_act="sigmoid"))
    E4_ref = ecell_reference(A, A_hat, error_act="sigmoid")
    assert jnp.allclose(E4, E4_ref, atol=1e-5, rtol=1e-5), "sigmoid mismatch"

    # Case 5: bf16 output (bandwidth-saving mode), relu stays exact after cast.
    E5 = jax.block_until_ready(
        ecell_forward(A, A_hat, error_act="relu", out_dtype=jnp.bfloat16))
    E5_ref = ecell_reference(A, A_hat, error_act="relu").astype(jnp.bfloat16)
    assert jnp.allclose(E5.astype(jnp.float32), E5_ref.astype(jnp.float32),
                        atol=1e-2, rtol=1e-2), "bf16 mismatch"

    print("KERNEL_OK")
</pallas_src>

<mosaic_0001>
module attributes {stable_mosaic.version = 11 : i64} {
  func.func @ecell_kernel(%arg0: i32, %arg1: memref<2x4x128xf32, #tpu.memory_space<vmem>>, %arg2: memref<2x4x128xf32, #tpu.memory_space<vmem>>, %arg3: memref<2x2x4x128xf32, #tpu.memory_space<vmem>>) attributes {dimension_semantics = [#tpu.dimension_semantics<parallel>], iteration_bounds = array<i64: 2>, scalar_prefetch = 0 : i64, scratch_operands = 0 : i64, tpu.core_type = #tpu.core_type<tc>, window_params = [{transform_indices = @transform_0, window_bounds = array<i64: 2, 4, 128>}, {transform_indices = @transform_1, window_bounds = array<i64: 2, 4, 128>}, {transform_indices = @transform_2, window_bounds = array<i64: 2, 2, 4, 128>}]} {
    %c0 = arith.constant 0 : index
    %c0_0 = arith.constant 0 : index
    %c0_1 = arith.constant 0 : index
    %0 = vector.load %arg1[%c0, %c0_0, %c0_1] : memref<2x4x128xf32, #tpu.memory_space<vmem>>, vector<2x4x128xf32>
    %c0_2 = arith.constant 0 : index
    %c0_3 = arith.constant 0 : index
    %c0_4 = arith.constant 0 : index
    %1 = vector.load %arg2[%c0_2, %c0_3, %c0_4] : memref<2x4x128xf32, #tpu.memory_space<vmem>>, vector<2x4x128xf32>
    %2 = arith.subf %0, %1 : vector<2x4x128xf32>
    %cst = arith.constant 0.000000e+00 : f32
    %3 = vector.broadcast %cst : f32 to vector<2x4x128xf32>
    %4 = arith.maximumf %2, %3 : vector<2x4x128xf32>
    %5 = arith.subf %4, %2 : vector<2x4x128xf32>
    %c0_5 = arith.constant 0 : index
    %c0_6 = arith.constant 0 : index
    %c0_7 = arith.constant 0 : index
    %c0_8 = arith.constant 0 : index
    %6 = vector.load %arg3[%c0_5, %c0_6, %c0_7, %c0_8] : memref<2x2x4x128xf32, #tpu.memory_space<vmem>>, vector<2x1x4x128xf32>
    %7 = vector.shape_cast %6 : vector<2x1x4x128xf32> to vector<2x4x128xf32>
    %8 = vector.shape_cast %4 : vector<2x4x128xf32> to vector<2x1x4x128xf32>
    tpu.vector_store %arg3[%c0_5, %c0_6, %c0_7, %c0_8], %8 {strides = array<i32>} : memref<2x2x4x128xf32, #tpu.memory_space<vmem>>, vector<2x1x4x128xf32>,
    %c0_9 = arith.constant 0 : index
    %c1 = arith.constant 1 : index
    %c0_10 = arith.constant 0 : index
    %c0_11 = arith.constant 0 : index
    %9 = vector.load %arg3[%c0_9, %c1, %c0_10, %c0_11] : memref<2x2x4x128xf32, #tpu.memory_space<vmem>>, vector<2x1x4x128xf32>
    %10 = vector.shape_cast %9 : vector<2x1x4x128xf32> to vector<2x4x128xf32>
    %11 = vector.shape_cast %5 : vector<2x4x128xf32> to vector<2x1x4x128xf32>
    tpu.vector_store %arg3[%c0_9, %c1, %c0_10, %c0_11], %11 {strides = array<i32>} : memref<2x2x4x128xf32, #tpu.memory_space<vmem>>, vector<2x1x4x128xf32>,
    return
  }
  func.func @transform_0(%arg0: i32) -> (i32, i32, i32) {
    %c0_i32 = arith.constant 0 : i32
    %c0_i32_0 = arith.constant 0 : i32
    %c0_i32_1 = arith.constant 0 : i32
    return %c0_i32, %c0_i32_0, %arg0 : i32, i32, i32
  }
  func.func @transform_1(%arg0: i32) -> (i32, i32, i32) {
    %c0_i32 = arith.constant 0 : i32
    %c0_i32_0 = arith.constant 0 : i32
    %c0_i32_1 = arith.constant 0 : i32
    return %c0_i32, %c0_i32_0, %arg0 : i32, i32, i32
  }
  func.func @transform_2(%arg0: i32) -> (i32, i32, i32, i32) {
    %c0_i32 = arith.constant 0 : i32
    %c0_i32_0 = arith.constant 0 : i32
    %c0_i32_1 = arith.constant 0 : i32
    %c0_i32_2 = arith.constant 0 : i32
    return %c0_i32, %c0_i32_0, %c0_i32_1, %arg0 : i32, i32, i32, i32
  }
}

</mosaic_0001>

<bundles_post_ra>
// kernel: tpu_custom_call.1
= control target key start
LH: loop header
LB: loop body
LE: loop exit
PB: predicated region body
PF: predicated region fallthrough
CT: control target
= control target key end

     0   :  { %7 = vsyncpa [#allocation3], 0  ;;  %s769_s0 = inlined_call_operand.hbm [shape: f32[2,4,256], index: 0, kind: input, shape index: {}]   ;;  %s770_s1 = inlined_call_operand.hbm [shape: f32[2,4,256], index: 1, kind: input, shape index: {}]   ;;  %s771_s2 = inlined_call_operand.hbm [shape: f32[2,2,4,256], index: 2, kind: output, shape index: {}]  }
   0x1   :  { %9 = vsyncpa [#allocation3 + $0x1], 0 }
   0x2   :  { %10 = vsyncpa [#allocation6], 0 }
   0x3   :  { %12 = vsyncpa [#allocation6 + $0x1], 0 }
   0x4   :  { %13 = vsyncpa [#allocation4], 0 }
   0x5   :  { %15 = vsyncpa [#allocation4 + $0x1], 0  ;;  %s548_s9 = smov 0   ;;  %s550_s10 = smov 0  }
   0x6   :  { %s552_s11 = smov 0   ;;  %s554_s12 = smov 0  }
   0x7 LB: > { %s569_s13 = sadd.s32 4294967295, %s522_s12   ;;  %s324_s14 = sadd.s32 4294967294, %s522_s12   ;;  %s522_s12 = sphi %s554_s12, %s788_s12   ;;  %s518_s11 = sphi %s552_s11, %s787_s11   ;;  %s514_s10 = sphi %s550_s10, %s786_s10   ;;  %s510_s9 = sphi %s548_s9, %s785_s9  }
   0x8   : > { %s573_s15 = sadd.s32 1, %s522_s12   ;;  %s28_s16 = sadd.s32 1, %s518_s11 }
   0x9   : > { %s25_s17 = ssub.s32 %s522_s12, %s573_s15  ;;  %p35_p0 = scmp.ne.s32.totalorder %s518_s11, %s514_s10 }
   0xa   : > { %p26_p1 = scmp.eq.s32.totalorder %s25_s17, 0  ;;  %p36_p2 = scmp.eq.s32.totalorder %s522_s12, 0 }
   0xb   : > { %p41_p3 = scmp.ne.s32.totalorder %s514_s10, %s510_s9  ;;  %p42_p4 = scmp.eq.s32.totalorder %s569_s13, 0 }
   0xc   : > { %s585_s18 = scalar_select %p26_p1, %s518_s11, %s28_s16  }
   0xd   : > { %p587_p5 = por %p36_p2, %p35_p0  ;;  %p591_p6 = por %p42_p4, %p41_p3 }
   0xe   : > { %p91_p7 = scmp.eq.s32.totalorder %s569_s13, 1  ;;  %p97_p8 = scmp.eq.s32.totalorder %s324_s14, 1 }
   0xf   : > { %s775_s20 = scalar_select %p591_p6, 1, 0 }
  0x10   : > { %p358_p10 = scmp.lt.s32.totalorder %s522_s12, 2  ;;  %p598_p11 = por %p91_p7, %p35_p0 }
  0x11   : > { %p602_p12 = por %p97_p8, %p41_p3  ;;  %s607_s23 = sand.u32 1, %s518_s11  }
  0x12   : > { %s776_s21 = scalar_select %p598_p11, 1, 0 }
  0x13   : > { %s777_s22 = scalar_select %p602_p12, 1, 0 }
  0x14   : > { %s328_s24 = sshll.u32 %s522_s12, 6  ;;  %s327_s25 = sshll.u32 %s607_s23, 3 }
  0x15   : > { %s616_s28 = scalar_lea.hbm %s769_s0, %s328_s24  ;;  %s121_s29 = scalar_lea.vmem [#allocation2], %s327_s25 }
  0x16   : > { %s127_s30 = sshll.u32 %s121_s29, 4  ;;  %p622_p13 = pnand %p358_p10, %p587_p5  ;;  %s626_s30 = int_to_ptr.vmem [resolvable:$true] %s127_s30 }
  0x17   : > { %s118_s4 = scalar_lea.sflag [#allocation3], %s607_s23  ;;  %s398_s5 = scalar_lea.hbm %s616_s28, 128 }
  0x18   : > { %p399_p1 = scmp.ne.s32.totalorder %s616_s28, %s398_s5  ;;  %p400_p2 = pneg %p622_p13 }
  0x19   : > { %s403_s8 = scalar_lea.hbm %s769_s0, 256  ;;  %p404_p5 = scmp.lt.s32.totalorder %s616_s28, %s769_s0 }
  0x1a   : > { %p401_p3 = pnand %p400_p2, %p399_p1  ;;  %p405_p7 = scmp.lt.s32.totalorder %s403_s8, %s398_s5 }
  0x1c   : > { %p402_p4 = pneg %p401_p3  ;;  %p406_p8 = por %p405_p7, %p404_p5 }
  0x1e   : > { %p407_p10 = pnand %p406_p8, %p402_p4 }
  0x20   : > { %410 = shalt.err (!%p407_p10)
}
  0x21   : > { %s411_s17 = scalar_lea.vmem %s626_s30, 128  ;;  %s524_s19 = smov [#allocation2]  }
  0x22   : > { %p412_p9 = scmp.ne.s32.totalorder %s626_s30, %s411_s17  ;;  %s416_s26 = sshll.u32 %s524_s19, 4  ;;  %s417_s26 = int_to_ptr.vmem [resolvable:$false] %s416_s26 }
  0x23   : > { %s418_s27 = scalar_lea.vmem %s417_s26, 256  ;;  %p419_p0 = scmp.lt.s32.totalorder %s626_s30, %s417_s26 }
  0x24   : > { %p414_p1 = pnand %p412_p9, %p400_p2  ;;  %p420_p12 = scmp.lt.s32.totalorder %s418_s27, %s411_s17 }
  0x26   : > { %p415_p3 = pneg %p414_p1  ;;  %p421_p11 = por %p420_p12, %p419_p0 }
  0x28   : > { %p422_p5 = pnand %p421_p11, %p415_p3 }
  0x2a   : > { %425 = shalt.err (!%p422_p5)
}
  0x2b   : > { %s525_s29 = smov 128   ;;  %s526_s5 = smov 64  }
  0x2c   : > { %s527_s6 = smov 4   ;;  %p155_p9 = scmp.lt.s32.totalorder %s522_s12, 3 }
  0x2d   : > { %350 = dma.hbm_to_vmem [thread:$0]  (!%p622_p13), %s616_s28, 128, %s626_s30, %s118_s4, %s525_s29, %s526_s5, %s527_s6  }
  0x2e   : > { %s665_s14 = scalar_lea.hbm %s770_s1, %s328_s24  ;;  %p779_p11 = scmp.ge.s32.totalorder %s522_s12, 1 }
  0x2f   : > { %s141_s17 = scalar_lea.vmem [#allocation5], %s327_s25  ;;  %s138_s28 = scalar_lea.sflag [#allocation6], %s607_s23 }
  0x30   : > { %p669_p12 = pnand %p779_p11, %p155_p9  ;;  %s147_s19 = sshll.u32 %s141_s17, 4  ;;  %s675_s19 = int_to_ptr.vmem [resolvable:$true] %s147_s19 }
  0x31   : > { %s426_s30 = scalar_lea.hbm %s665_s14, 128  ;;  %s431_s26 = scalar_lea.hbm %s770_s1, 256 }
  0x32   : > { %p427_p0 = scmp.ne.s32.totalorder %s665_s14, %s426_s30  ;;  %p432_p8 = scmp.lt.s32.totalorder %s665_s14, %s770_s1 }
  0x33   : > { %p433_p10 = scmp.lt.s32.totalorder %s431_s26, %s426_s30 }
  0x34   : > { %p429_p4 = pnand %p427_p0, %p400_p2 }
  0x35   : > { %p434_p1 = por %p433_p10, %p432_p8 }
  0x36   : > { %p430_p7 = pneg %p429_p4 }
  0x38   : > { %p435_p3 = pnand %p434_p1, %p430_p7 }
  0x3a   : > { %438 = shalt.err (!%p435_p3)
}
  0x3b   : > { %s439_s23 = scalar_lea.vmem %s675_s19, 128  ;;  %s528_s25 = smov [#allocation5]  }
  0x3c   : > { %p440_p5 = scmp.ne.s32.totalorder %s675_s19, %s439_s23  ;;  %s444_s8 = sshll.u32 %s528_s25, 4  ;;  %s445_s8 = int_to_ptr.vmem [resolvable:$false] %s444_s8 }
  0x3d   : > { %s446_s17 = scalar_lea.vmem %s445_s8, 256  ;;  %p447_p0 = scmp.lt.s32.totalorder %s675_s19, %s445_s8 }
  0x3e   : > { %p442_p9 = pnand %p440_p5, %p400_p2  ;;  %p448_p4 = scmp.lt.s32.totalorder %s446_s17, %s439_s23 }
  0x40   : > { %p443_p11 = pneg %p442_p9  ;;  %p449_p6 = por %p448_p4, %p447_p0 }
  0x42   : > { %p450_p8 = pnand %p449_p6, %p443_p11 }
  0x44   : > { %453 = shalt.err (!%p450_p8)
}
  0x45   : > { %353 = dma.hbm_to_vmem [thread:$0]  (!%p622_p13), %s665_s14, 128, %s675_s19, %s138_s28, %s525_s29, %s526_s5, %s527_s6  }
  0x46   : > { %159 = sbr.rel (%p669_p12) target bundleno = 106 (0x6a), region = 28  ;;  %s706_s30 = sand.u32 (!%p669_p12), 1, %s514_s10  }
  0x47   : > { %s332_s24 = sshll.u32 (!%p669_p12), %s706_s30, 3  ;;  %s162_s4 = scalar_lea.sflag (!%p669_p12), [#allocation3], %s706_s30 }
  0x48   : > { %s165_s26 = scalar_lea.vmem (!%p669_p12), [#allocation2], %s332_s24  ;;  %p781_p6 = scmp.ne.s32.totalorder (!%p669_p12), %s775_s20, 0 }
  0x4b   : > { %497 = dma.done.wait (%p781_p6), %s162_s4, 128  }
  0x4c   : > { %499 = vsyncadd (%p781_p6), %s162_s4, 4294967168  ;;  %s171_s3 = scalar_lea.sflag [#allocation6], %s706_s30  ;;  %s174_s29 = scalar_lea.vmem [#allocation5], %s332_s24 }
  0x4d   : > { %501 = dma.done.wait (%p781_p6), %s171_s3, 128  }
  0x4e   : > { %503 = vsyncadd (%p781_p6), %s171_s3, 4294967168  ;;  %s334_s5 = sshll.u32 %s706_s30, 4  ;;  %v200_v0 = vld [vmem:[%s165_s26] sm:$0xf]  ;;  %v202_v1 = vld [vmem:[%s174_s29] sm:$0xf] }
  0x4f   : > { %v201_v2 = vld [vmem:[%s165_s26 + $0x4] sm:$0xf]  ;;  %v204_v3 = vsub.f32 %v200_v0, %v202_v1  ;;  %v203_v4 = vld [vmem:[%s174_s29 + $0x4] sm:$0xf]  ;;  %s338_s6 = sshll.u32 %s569_s13, 6  ;;  %s199_s14 = scalar_lea.vmem [#allocation7], %s334_s5 }
  0x50   : > { %s228_s16 = sshll.u32 %s199_s14, 4  ;;  %v205_v5 = vsub.f32 %v201_v2, %v203_v4  ;;  %s724_s20 = scalar_lea.hbm %s771_s2, %s338_s6  ;;  %s726_s16 = int_to_ptr.vmem [resolvable:$true] %s228_s16 }
  0x51   : > { %v206_v6 = vmax.f32 %v204_v3, 0.0  ;;  %s216_s13 = scalar_lea.sflag [#allocation4], %s706_s30  ;;  %s454_s27 = scalar_lea.vmem %s726_s16, 256 }
  0x52   : > { %v207_v7 = vmax.f32 %v205_v5, 0.0  ;;  %p455_p13 = scmp.ne.s32.totalorder %s726_s16, %s454_s27  ;;  %p782_p2 = scmp.ne.s32.totalorder %s776_s21, 0 }
  0x53   : > { %210 = vst [vmem:[%s199_s14] sm:$0xf] %v206_v6  ;;  %v208_v8 = vsub.f32 %v206_v6, %v204_v3  ;;  %s529_s7 = smov [#allocation7]  }
  0x54   : > { %211 = vst [vmem:[%s199_s14 + $0x8] sm:$0xf] %v207_v7  ;;  %v209_v9 = vsub.f32 %v207_v7, %v205_v5  ;;  %p456_p12 = pnand %p455_p13, %p782_p2  ;;  %s458_s23 = sshll.u32 %s529_s7, 4  ;;  %s459_s23 = int_to_ptr.vmem [resolvable:$false] %s458_s23 }
  0x55   : > { %335 = vst [vmem:[%s199_s14 + $0x4] sm:$0xf] %v208_v8  ;;  %s460_s25 = scalar_lea.vmem %s459_s23, 512  ;;  %p461_p10 = scmp.lt.s32.totalorder %s726_s16, %s459_s23 }
  0x56   : > { %336 = vst [vmem:[%s199_s14 + $0xc] sm:$0xf] %v209_v9  ;;  %p457_p7 = pneg %p456_p12  ;;  %p462_p1 = scmp.lt.s32.totalorder %s460_s25, %s454_s27 }
  0x58   : > { %p463_p3 = por %p462_p1, %p461_p10 }
  0x5a   : > { %p464_p5 = pnand %p463_p3, %p457_p7 }
  0x5c   : > { %467 = shalt.err (!%p464_p5)
}
  0x5d   : > { %s468_s8 = scalar_lea.hbm %s724_s20, 256  ;;  %s472_s4 = scalar_lea.hbm %s771_s2, 512 }
  0x5e   : > { %p469_p9 = scmp.ne.s32.totalorder %s724_s20, %s468_s8  ;;  %p473_p4 = scmp.lt.s32.totalorder %s724_s20, %s771_s2 }
  0x5f   : > { %p474_p8 = scmp.lt.s32.totalorder %s472_s4, %s468_s8 }
  0x60   : > { %p470_p11 = pnand %p469_p9, %p782_p2 }
  0x61   : > { %p475_p6 = por %p474_p8, %p473_p4 }
  0x62   : > { %p471_p0 = pneg %p470_p11 }
  0x64   : > { %p476_p13 = pnand %p475_p6, %p471_p0 }
  0x66   : > { %479 = shalt.err (!%p476_p13)
}
  0x67   : > { %s530_s29 = smov 64   ;;  %s531_s5 = smov 128  }
  0x68   : > { %s532_s6 = smov 4  }
  0x69   : > { %345 = dma.vmem_to_hbm [thread:$0]  (%p782_p2), %s726_s16, 256, %s724_s20, %s216_s13, %s530_s29, %s531_s5, %s532_s6  }
  0x6a PF: > { %s243_s14 = sand.u32 1, %s510_s9   ;;  %p783_p12 = scmp.ne.s32.totalorder %s777_s22, 0 }
  0x6b   : > { %p784_p7 = scmp.ge.s32.totalorder %s522_s12, 2  ;;  %s244_s19 = scalar_lea.sflag [#allocation4], %s243_s14 }
  0x6d   : > { %p355_p10 = pnand %p784_p7, %p783_p12 }
  0x6f   : > { %p356_p1 = pneg %p355_p10 }
  0x71   : > { %505 = dma.done.wait (%p356_p1), %s244_s19, 256  }
  0x72   : > { %507 = vsyncadd (%p356_p1), %s244_s19, 4294967040  ;;  %p18_p3 = scmp.ge.s32.totalorder %s573_s15, 4   ;;  %s785_s9 = smov %s514_s10 }
  0x73   : > { %s786_s10 = smov %s518_s11  ;;  %s787_s11 = smov %s585_s18 }
  0x74   : > { %s788_s12 = smov %s573_s15  ;;  %20 = sbr.rel (!%p18_p3) target bundleno = 7 (0x7), region = 87 }
  0x79   :  { %249 = vsyncpa [#allocation3], 1 }
  0x7a   :  { %251 = vsyncpa [#allocation3 + $0x1], 1 }
  0x7b   :  { %252 = vsyncpa [#allocation6], 1 }
  0x7c   :  { %254 = vsyncpa [#allocation6 + $0x1], 1 }
  0x7d   :  { %255 = vsyncpa [#allocation4], 1 }
  0x7e   :  { %257 = vsyncpa [#allocation4 + $0x1], 1 }

</bundles_post_ra>
